<compile_context>
chip_gen: v6e
topology: v6e:2x2x1
jax: 0.10.0
libtpu: 0.0.40
codegen_flags: <defaults>
</compile_context>

<pallas_src>
import math

import jax
import jax.numpy as jnp
from jax.experimental import pallas as pl
from jax.experimental.pallas import tpu as pltpu


# ---------------------------------------------------------------------------
# Hardware queries (best effort, safe fallbacks).
# ---------------------------------------------------------------------------
def _vmem_capacity_bytes():
    try:
        cap = int(pltpu.get_tpu_info().vmem_capacity_bytes)
        if cap > 0:
            return cap
    except Exception:
        pass
    return 64 << 20          # conservative: every supported generation has >= 64 MiB


def _tensorcores_per_chip():
    try:
        kind = jax.devices()[0].device_kind.lower()
    except Exception:
        return 1
    # v7x (and v4/v5p megacore parts) expose two TensorCores per device.
    return 2 if any(tag in kind for tag in ("v7", "7x", "v4", "v5p")) else 1


# ---------------------------------------------------------------------------
# Fused single-call kernel (x fits in VMEM): grid = (2, n_blocks).
#   phase 0: stream x blocks from HBM, accumulate sum(x^2), park x in VMEM.
#   phase 1: stream scaled output blocks back to HBM.
# Total HBM traffic ~ 2N bytes (one read of x + one write of out), with the
# block pipeline overlapping reads (phase 0) and writes (phase 1) with compute.
# ---------------------------------------------------------------------------
def _fused_kernel(w_ref, x_ref, o_ref, xcopy_ref, ssq_ref):
    p = pl.program_id(0)            # phase
    i = pl.program_id(1)            # row-block index
    rb = x_ref.shape[0]
    off = pl.multiple_of(i * rb, 8)

    @pl.when((p == 0) & (i == 0))
    def _():
        ssq_ref[...] = jnp.zeros_like(ssq_ref)

    @pl.when(p == 0)
    def _():
        xf = x_ref[...].astype(jnp.float32)
        ssq_ref[...] += jnp.sum(xf * xf)            # (1,1) accumulator
        xcopy_ref[pl.ds(off, rb), :] = x_ref[...]   # park raw x in VMEM

    @pl.when(p == 1)
    def _():
        inv = 1.0 / (jnp.sqrt(ssq_ref[...]) + 1e-6)          # (1, 1)
        ws = w_ref[...].astype(jnp.float32) * inv            # (1, L)
        xb = xcopy_ref[pl.ds(off, rb), :].astype(jnp.float32)
        o_ref[...] = (xb * ws).astype(o_ref.dtype)


# ---------------------------------------------------------------------------
# Tiled path, pass 1: per-chunk partial sum of squares.
# Accumulator is (8, L): sublane-group strided adds, no full-tile acc traffic.
# ---------------------------------------------------------------------------
def _sumsq_kernel(x_ref, out_ref, acc_ref):
    @pl.when(pl.program_id(1) == 0)
    def _():
        acc_ref[...] = jnp.zeros_like(acc_ref)

    xf = x_ref[...].astype(jnp.float32)
    sq = xf * xf
    rb, L = sq.shape
    ar = acc_ref.shape[0]
    if rb == ar:
        acc_ref[...] += sq
    else:
        # Pure strided VALU adds (sublane-group reshape), no XLU per step.
        acc_ref[...] += jnp.sum(sq.reshape(rb // ar, ar, L), axis=0)

    # Single cross-lane/sublane reduction, only on the chunk's last step.
    @pl.when(pl.program_id(1) == pl.num_programs(1) - 1)
    def _():
        total = jnp.sum(acc_ref[...])
        out_ref[...] = jnp.full(out_ref.shape, total, jnp.float32)


# ---------------------------------------------------------------------------
# Tiled path, pass 2: out = x * (w * inv).  The per-chunk partials are fed in
# directly (constant-index VMEM block); the scalar epilogue (sum over chunks,
# sqrt, reciprocal) is folded in here — a handful of VPU ops per grid step,
# so the axis stays "parallel" (megacore-safe, no init step needed).
# ---------------------------------------------------------------------------
def _scale_kernel(ps_ref, w_ref, x_ref, o_ref):
    t = ps_ref[0]                                   # (8,128), filled with chunk-0 total
    for c in range(1, ps_ref.shape[0]):
        t = t + ps_ref[c]
    inv = 1.0 / (jnp.sqrt(t[0:1, 0:1]) + 1e-6)      # (1, 1)
    ws = w_ref[...].astype(jnp.float32) * inv       # (1, L)
    o_ref[...] = (x_ref[...].astype(jnp.float32) * ws).astype(o_ref.dtype)


def _pick_row_block(n_rows, lane_width, itemsize, target_bytes, prefer_even=False):
    """Largest sublane-aligned divisor of n_rows whose tile is <= target_bytes.

    Returns n_rows itself when the whole array fits the target or n_rows is
    tiny (full-array blocks are always legal).  Returns None when no aligned
    divisor exists — the caller zero-pads instead of using an unaligned block.
    """
    sub = {4: 8, 2: 16, 1: 32}.get(itemsize, 8)
    row_bytes = max(1, lane_width * itemsize)
    if n_rows * row_bytes <= target_bytes or n_rows <= sub:
        return n_rows
    max_rows = max(sub, (target_bytes // row_bytes) // sub * sub)
    best = None
    cand = min(max_rows, (n_rows // sub) * sub)
    while cand >= sub:
        if n_rows % cand == 0:
            if not prefer_even or (n_rows // cand) % 2 == 0:
                return cand
            if best is None:
                best = cand
        cand -= sub
    return best


def rms_normal(x, w, *,
               fused_max_bytes=None,     # None -> derived from VMEM capacity
               target_tile_bytes=None,   # None -> 4 MiB on 2-TC chips, else 2 MiB
               num_chunks=None):         # None -> 2 on 2-TC chips, else 1
    """Pallas implementation of RMSNormal.forward (global L2 normalization)."""
    orig_shape = x.shape
    H = x.shape[-1]
    N = x.size
    R = N // H
    itemsize = x.dtype.itemsize

    cores = _tensorcores_per_chip()
    vmem_cap = _vmem_capacity_bytes()
    vmem_limit = max(min(int(vmem_cap * 3 // 4), vmem_cap - (16 << 20)),
                     min(vmem_cap, 32 << 20))
    if target_tile_bytes is None:
        target_tile_bytes = (4 << 20) if cores >= 2 else (2 << 20)
    if fused_max_bytes is None:
        # xcopy scratch (= x bytes) + double-buffered in/out tiles + slack.
        fused_max_bytes = max(1 << 20,
                              vmem_limit - 4 * target_tile_bytes - (12 << 20))

    # ---- lane-dense 2-D layout: fold rows into lanes so L % 128 == 0 -------
    fold = 1
    if H % 128 != 0:
        k = 128 // math.gcd(H, 128)
        if R % k == 0:
            fold = k
    L = H * fold
    Rr = R // fold
    x2 = x.reshape(Rr, L)
    w2 = (jnp.tile(w, fold) if fold > 1 else w).reshape(1, L)

    x_bytes = Rr * L * itemsize

    # ---- fused path: one HBM read + one HBM write (x parked in VMEM) -------
    if x_bytes <= fused_max_bytes:
        rb = _pick_row_block(Rr, L, itemsize, target_tile_bytes)
        if rb is not None:
            nb = Rr // rb
            out = pl.pallas_call(
                _fused_kernel,
                out_shape=jax.ShapeDtypeStruct((Rr, L), x.dtype),
                grid_spec=pltpu.PrefetchScalarGridSpec(
                    num_scalar_prefetch=0,
                    grid=(2, nb),
                    in_specs=[
                        pl.BlockSpec((1, L), lambda p, i: (0, 0)),             # weight
                        pl.BlockSpec((rb, L), lambda p, i: ((1 - p) * i, 0)),  # x stream
                    ],
                    out_specs=pl.BlockSpec((rb, L), lambda p, i: (p * i, 0)),
                    scratch_shapes=[pltpu.VMEM((Rr, L), x.dtype),        # x copy
                                    pltpu.VMEM((1, 1), jnp.float32)],    # sum(x^2)
                ),
                compiler_params=pltpu.CompilerParams(
                    dimension_semantics=("arbitrary", "arbitrary"),
                    vmem_limit_bytes=vmem_limit),
            )(w2, x2)
            return out.reshape(orig_shape)

    # ---- tiled two-pass path (x larger than the VMEM budget) ----------------
    want_split = (num_chunks == 2) or (num_chunks is None and cores >= 2)
    row_block = _pick_row_block(Rr, L, itemsize, target_tile_bytes,
                                prefer_even=want_split)
    Rr_pad = Rr
    x2p = x2
    if row_block is None:
        # No sublane-aligned divisor: zero-pad the row axis (zeros contribute 0
        # to the sum of squares; padded output rows are sliced off below).
        sub = {4: 8, 2: 16, 1: 32}.get(itemsize, 8)
        row_block = max(sub,
                        (target_tile_bytes // max(1, L * itemsize)) // sub * sub)
        mult = row_block * (2 if want_split else 1)
        Rr_pad = ((Rr + mult - 1) // mult) * mult
        x2p = jnp.pad(x2, ((0, Rr_pad - Rr), (0, 0)))
    n_blocks = Rr_pad // row_block

    chunks = 2 if (want_split and n_blocks >= 2 and n_blocks % 2 == 0) else 1
    inner = n_blocks // chunks
    acc_rows = 8 if row_block % 8 == 0 else row_block

    partials = pl.pallas_call(
        _sumsq_kernel,
        out_shape=jax.ShapeDtypeStruct((chunks, 8, 128), jnp.float32),
        grid_spec=pltpu.PrefetchScalarGridSpec(
            num_scalar_prefetch=0,
            grid=(chunks, inner),
            in_specs=[pl.BlockSpec((row_block, L),
                                   lambda c, i: (c * inner + i, 0))],
            out_specs=pl.BlockSpec((1, 8, 128), lambda c, i: (c, 0, 0)),
            scratch_shapes=[pltpu.VMEM((acc_rows, L), jnp.float32)],
        ),
        compiler_params=pltpu.CompilerParams(
            dimension_semantics=("parallel", "arbitrary"),
            vmem_limit_bytes=vmem_limit),
    )(x2p)

    out = pl.pallas_call(
        _scale_kernel,
        out_shape=jax.ShapeDtypeStruct((Rr_pad, L), x.dtype),
        grid_spec=pltpu.PrefetchScalarGridSpec(
            num_scalar_prefetch=0,
            grid=(n_blocks,),
            in_specs=[
                pl.BlockSpec((chunks, 8, 128), lambda i: (0, 0, 0)),   # partials
                pl.BlockSpec((1, L), lambda i: (0, 0)),                # weight
                pl.BlockSpec((row_block, L), lambda i: (i, 0)),        # x tile
            ],
            out_specs=pl.BlockSpec((row_block, L), lambda i: (i, 0)),
        ),
        compiler_params=pltpu.CompilerParams(
            dimension_semantics=("parallel",),
            vmem_limit_bytes=vmem_limit),
    )(partials, w2, x2p)

    if Rr_pad != Rr:
        out = out[:Rr]
    return out.reshape(orig_shape)


def rms_normal_ref(x, w):
    """Pure-JAX reference matching the PyTorch forward exactly."""
    return w * x / (jnp.sqrt(jnp.sum(x ** 2)) + 1e-6)


if __name__ == "__main__":
    key = jax.random.PRNGKey(0)
    k1, k2, k3, k4, k5, k6, k7, k8 = jax.random.split(key, 8)

    # 1) Small shape implied by the module (batch, seq, hidden): fused path.
    x = jax.random.normal(k1, (2, 8, 32), dtype=jnp.float32)
    w = jax.random.normal(k2, (32,), dtype=jnp.float32)   # ~ torch.randn(input_dim)
    out = jax.block_until_ready(rms_normal(x, w))
    ref = rms_normal_ref(x, w)
    assert out.shape == ref.shape and out.dtype == ref.dtype
    assert jnp.allclose(out, ref, rtol=1e-5, atol=1e-6)

    # 2) Fused path with several row blocks (exercises the two-phase grid).
    x2 = jax.random.normal(k3, (8, 128, 64), dtype=jnp.float32)
    w2 = jax.random.normal(k4, (64,), dtype=jnp.float32)
    out2 = jax.block_until_ready(
        rms_normal(x2, w2, target_tile_bytes=64 * 128 * 4))
    assert jnp.allclose(out2, rms_normal_ref(x2, w2), rtol=1e-5, atol=1e-6)

    # 3) Tiled two-pass path with the 2-chunk split forced and the (8, L)
    #    strided-accumulator path exercised (row_block = 16 > 8).
    x3 = jax.random.normal(k5, (4, 64, 32), dtype=jnp.float32)
    w3 = jax.random.normal(k6, (32,), dtype=jnp.float32)
    out3 = jax.block_until_ready(
        rms_normal(x3, w3, fused_max_bytes=0, target_tile_bytes=16 * 128 * 4,
                   num_chunks=2))
    assert jnp.allclose(out3, rms_normal_ref(x3, w3), rtol=1e-5, atol=1e-6)

    # 4) Tiled path, zero-pad fallback (row count with no aligned divisor).
    x4 = jax.random.normal(k7, (3, 24, 32), dtype=jnp.float32)
    w4 = jax.random.normal(k8, (32,), dtype=jnp.float32)
    out4 = jax.block_until_ready(
        rms_normal(x4, w4, fused_max_bytes=0, target_tile_bytes=8 * 128 * 4))
    assert jnp.allclose(out4, rms_normal_ref(x4, w4), rtol=1e-5, atol=1e-6)

    print("KERNEL_OK")
</pallas_src>

<mosaic_0001>
module attributes {stable_mosaic.version = 11 : i64} {
  func.func @_fused_kernel(%arg0: i32, %arg1: i32, %arg2: memref<1x128xf32, #tpu.memory_space<vmem>>, %arg3: memref<4x128xf32, #tpu.memory_space<vmem>>, %arg4: memref<4x128xf32, #tpu.memory_space<vmem>>, %arg5: memref<4x128xf32, #tpu.memory_space<vmem>>, %arg6: memref<1x1xf32, #tpu.memory_space<vmem>>) attributes {dimension_semantics = [#tpu.dimension_semantics<arbitrary>, #tpu.dimension_semantics<arbitrary>], iteration_bounds = array<i64: 2, 1>, scalar_prefetch = 0 : i64, scratch_operands = 2 : i64, tpu.core_type = #tpu.core_type<tc>, window_params = [{pipeline_mode = #tpu.pipeline_mode<synchronous>, transform_indices = @transform_0, window_bounds = array<i64: 1, 128>}, {transform_indices = @transform_1, window_bounds = array<i64: 4, 128>}, {transform_indices = @transform_2, window_bounds = array<i64: 4, 128>}]} {
    %c4_i32 = arith.constant 4 : i32
    %0 = arith.muli %arg1, %c4_i32 : i32
    %1 = tpu.assume_multiple %0, 8 : i32
    %c0_i32 = arith.constant 0 : i32
    %2 = arith.cmpi eq, %arg0, %c0_i32 : i32
    %c0_i32_0 = arith.constant 0 : i32
    %3 = arith.cmpi eq, %arg1, %c0_i32_0 : i32
    %4 = arith.andi %2, %3 : i1
    %5 = arith.extui %4 : i1 to i32
    %c0_i32_1 = arith.constant 0 : i32
    %6 = arith.cmpi ne, %5, %c0_i32_1 : i32
    scf.if %6 {
      %cst = arith.constant 0.000000e+00 : f32
      %13 = vector.broadcast %cst : f32 to vector<1x1xf32>
      %c0 = arith.constant 0 : index
      %c0_5 = arith.constant 0 : index
      %14 = vector.load %arg6[%c0, %c0_5] : memref<1x1xf32, #tpu.memory_space<vmem>>, vector<1x1xf32>
      tpu.vector_store %arg6[%c0, %c0_5], %13 {strides = array<i32>} : memref<1x1xf32, #tpu.memory_space<vmem>>, vector<1x1xf32>,
    } else {
    }
    %c0_i32_2 = arith.constant 0 : i32
    %7 = arith.cmpi eq, %arg0, %c0_i32_2 : i32
    %8 = arith.extui %7 : i1 to i32
    %c0_i32_3 = arith.constant 0 : i32
    %9 = arith.cmpi ne, %8, %c0_i32_3 : i32
    scf.if %9 {
      %c0 = arith.constant 0 : index
      %c0_5 = arith.constant 0 : index
      %13 = vector.load %arg3[%c0, %c0_5] : memref<4x128xf32, #tpu.memory_space<vmem>>, vector<4x128xf32>
      %c0_6 = arith.constant 0 : index
      %c0_7 = arith.constant 0 : index
      %14 = vector.load %arg6[%c0_6, %c0_7] : memref<1x1xf32, #tpu.memory_space<vmem>>, vector<1x1xf32>
      %15 = arith.mulf %13, %13 : vector<4x128xf32>
      %16 = vector.shape_cast %15 : vector<4x128xf32> to vector<1x4x128xf32>
      %cst = arith.constant dense<0.000000e+00> : vector<1xf32>
      %17 = vector.multi_reduction <add>, %16, %cst [1, 2] : vector<1x4x128xf32> to vector<1xf32>
      %18 = vector.shape_cast %17 : vector<1xf32> to vector<1x1x1xf32>
      %19 = vector.extract %18[0, 0, 0] : f32 from vector<1x1x1xf32>
      %20 = vector.broadcast %19 : f32 to vector<1x1xf32>
      %21 = arith.addf %14, %20 : vector<1x1xf32>
      %c0_8 = arith.constant 0 : index
      %c0_9 = arith.constant 0 : index
      %22 = vector.load %arg6[%c0_8, %c0_9] : memref<1x1xf32, #tpu.memory_space<vmem>>, vector<1x1xf32>
      tpu.vector_store %arg6[%c0_8, %c0_9], %21 {strides = array<i32>} : memref<1x1xf32, #tpu.memory_space<vmem>>, vector<1x1xf32>,
      %c0_10 = arith.constant 0 : index
      %c0_11 = arith.constant 0 : index
      %23 = vector.load %arg3[%c0_10, %c0_11] : memref<4x128xf32, #tpu.memory_space<vmem>>, vector<4x128xf32>
      %24 = arith.index_cast %1 : i32 to index
      %c0_12 = arith.constant 0 : index
      %25 = vector.load %arg5[%24, %c0_12] : memref<4x128xf32, #tpu.memory_space<vmem>>, vector<4x128xf32>
      tpu.vector_store %arg5[%24, %c0_12], %23 {strides = array<i32>} : memref<4x128xf32, #tpu.memory_space<vmem>>, vector<4x128xf32>,
    } else {
    }
    %c1_i32 = arith.constant 1 : i32
    %10 = arith.cmpi eq, %arg0, %c1_i32 : i32
    %11 = arith.extui %10 : i1 to i32
    %c0_i32_4 = arith.constant 0 : i32
    %12 = arith.cmpi ne, %11, %c0_i32_4 : i32
    scf.if %12 {
      %c0 = arith.constant 0 : index
      %c0_5 = arith.constant 0 : index
      %13 = vector.load %arg6[%c0, %c0_5] : memref<1x1xf32, #tpu.memory_space<vmem>>, vector<1x1xf32>
      %14 = math.sqrt %13 : vector<1x1xf32>
      %cst = arith.constant 9.99999997E-7 : f32
      %15 = vector.broadcast %cst : f32 to vector<1x1xf32>
      %16 = arith.addf %14, %15 : vector<1x1xf32>
      %cst_6 = arith.constant 1.000000e+00 : f32
      %17 = vector.broadcast %cst_6 : f32 to vector<1x1xf32>
      %18 = arith.divf %17, %16 : vector<1x1xf32>
      %c0_7 = arith.constant 0 : index
      %c0_8 = arith.constant 0 : index
      %19 = vector.load %arg2[%c0_7, %c0_8] : memref<1x128xf32, #tpu.memory_space<vmem>>, vector<1x128xf32>
      %20 = vector.broadcast %18 : vector<1x1xf32> to vector<1x128xf32>
      %21 = arith.mulf %19, %20 : vector<1x128xf32>
      %22 = arith.index_cast %1 : i32 to index
      %c0_9 = arith.constant 0 : index
      %23 = vector.load %arg5[%22, %c0_9] : memref<4x128xf32, #tpu.memory_space<vmem>>, vector<4x128xf32>
      %24 = vector.broadcast %21 : vector<1x128xf32> to vector<4x128xf32>
      %25 = arith.mulf %23, %24 : vector<4x128xf32>
      %c0_10 = arith.constant 0 : index
      %c0_11 = arith.constant 0 : index
      %26 = vector.load %arg4[%c0_10, %c0_11] : memref<4x128xf32, #tpu.memory_space<vmem>>, vector<4x128xf32>
      tpu.vector_store %arg4[%c0_10, %c0_11], %25 {strides = array<i32>} : memref<4x128xf32, #tpu.memory_space<vmem>>, vector<4x128xf32>,
    } else {
    }
    return
  }
  func.func @transform_0(%arg0: i32, %arg1: i32) -> (i32, i32) {
    %c0_i32 = arith.constant 0 : i32
    %c0_i32_0 = arith.constant 0 : i32
    %c0_i32_1 = arith.constant 0 : i32
    return %c0_i32, %c0_i32_0 : i32, i32
  }
  func.func @transform_1(%arg0: i32, %arg1: i32) -> (i32, i32) {
    %c1_i32 = arith.constant 1 : i32
    %0 = arith.subi %c1_i32, %arg0 : i32
    %1 = arith.muli %0, %arg1 : i32
    %c0_i32 = arith.constant 0 : i32
    %c0_i32_0 = arith.constant 0 : i32
    return %1, %c0_i32 : i32, i32
  }
  func.func @transform_2(%arg0: i32, %arg1: i32) -> (i32, i32) {
    %0 = arith.muli %arg0, %arg1 : i32
    %c0_i32 = arith.constant 0 : i32
    %c0_i32_0 = arith.constant 0 : i32
    return %0, %c0_i32 : i32, i32
  }
}

</mosaic_0001>

<bundles_post_ra>
// kernel: tpu_custom_call.1
= control target key start
LH: loop header
LB: loop body
LE: loop exit
PB: predicated region body
PF: predicated region fallthrough
CT: control target
= control target key end

     0   :  { %7 = vsyncpa [#allocation5], 0  ;;  %s686_s0 = inlined_call_operand.hbm [shape: f32[1,128], index: 0, kind: input, shape index: {}]   ;;  %s687_s1 = inlined_call_operand.hbm [shape: f32[4,128], index: 1, kind: input, shape index: {}]   ;;  %s688_s2 = inlined_call_operand.hbm [shape: f32[4,128], index: 2, kind: output, shape index: {}]  }
   0x1   :  { %8 = vsyncpa [#allocation8], 0 }
   0x2   :  { %10 = vsyncpa [#allocation8 + $0x1], 0 }
   0x3   :  { %11 = vsyncpa [#allocation6], 0 }
   0x4   :  { %13 = vsyncpa [#allocation6 + $0x1], 0  ;;  %s590_s9 = smov 0   ;;  %s592_s10 = smov 0  }
   0x5   :  { %s594_s11 = smov 0  }
   0x6 LB: > { %s373_s12 = sadd.s32 4294967295, %s568_s11   ;;  %s374_s13 = sadd.s32 4294967294, %s568_s11   ;;  %s568_s11 = sphi %s594_s11, %s19_s11   ;;  %s564_s10 = sphi %s592_s10, %s698_s10   ;;  %s560_s9 = sphi %s590_s9, %s697_s9  }
   0x7   : > { %s31_s14 = sadd.s32 1, %s564_s10  ;;  %p375_p0 = scmp.ge.s32.totalorder %s568_s11, 1 }
   0x8   : > { %p33_p1 = scmp.ge.s32.totalorder %s31_s14, 2  ;;  %p115_p2 = scmp.lt.s32.totalorder %s568_s11, 3 }
   0x9   : > { %p612_p3 = scmp.eq.s32.totalorder %s373_s12, 0  ;;  %s570_s17 = smov [#allocation4]  }
   0xa   : > { %s700_s14 = smov (%p33_p1, %s31_s14), 0  ;;  %p618_p4 = pnand %p375_p0, %p115_p2 }
   0xb   : > { %s691_s15 = scalar_select %p612_p3, 1, 0 }
   0xc   : > { %s128_s18 = sshll.u32 %s570_s17, 4  ;;  %p404_p6 = pneg %p618_p4  ;;  %s129_s18 = int_to_ptr.vmem [resolvable:$true] %s128_s18 }
   0xd   : > { %p417_p7 = scmp.lt.s32.totalorder %s568_s11, 2  ;;  %p418_p9 = scmp.eq.s32.totalorder %s568_s11, 0 }
   0xe   : > { %p628_p8 = pnand %p612_p3, %p404_p6  ;;  %s571_s20 = smov [#allocation7]  }
   0xf   : > { %s152_s21 = sshll.u32 %s571_s20, 4  ;;  %s469_s22 = scalar_lea.vmem %s129_s18, 16  ;;  %s153_s21 = int_to_ptr.vmem [resolvable:$true] %s152_s21 }
  0x10   : > { %p460_p10 = pneg %p628_p8  ;;  %p470_p11 = scmp.ne.s32.totalorder %s129_s18, %s469_s22 }
  0x11   : > { %s476_s23 = scalar_lea.vmem %s129_s18, 32  ;;  %p477_p0 = scmp.lt.s32.totalorder %s129_s18, %s129_s18 }
  0x12   : > { %p472_p12 = pnand %p470_p11, %p460_p10  ;;  %p478_p1 = scmp.lt.s32.totalorder %s476_s23, %s469_s22 }
  0x14   : > { %p473_p13 = pneg %p472_p12  ;;  %p479_p2 = por %p478_p1, %p477_p0 }
  0x16   : > { %p480_p5 = pnand %p479_p2, %p473_p13 }
  0x18   : > { %483 = shalt.err (!%p480_p5)
}
  0x19   : > { %407 = dma.hbm_to_vmem [thread:$0]  (!%p628_p8), %s686_s0, 16, %s129_s18, [#allocation5]  }
  0x1a   : > { %p409_p6 = pnand %p418_p9, %p417_p7  ;;  %s495_s26 = scalar_lea.vmem %s153_s21, 64 }
  0x1b   : > { %p496_p11 = scmp.ne.s32.totalorder %s153_s21, %s495_s26  ;;  %s502_s27 = scalar_lea.vmem %s153_s21, 128 }
  0x1c   : > { %p486_p10 = pneg %p409_p6  ;;  %p503_p13 = scmp.lt.s32.totalorder %s153_s21, %s153_s21 }
  0x1d   : > { %p504_p5 = scmp.lt.s32.totalorder %s502_s27, %s495_s26 }
  0x1e   : > { %p498_p12 = pnand %p496_p11, %p486_p10 }
  0x1f   : > { %p505_p0 = por %p504_p5, %p503_p13 }
  0x20   : > { %p499_p3 = pneg %p498_p12 }
  0x22   : > { %p506_p1 = pnand %p505_p0, %p499_p3 }
  0x24   : > { %509 = shalt.err (!%p506_p1)
}
  0x25   : > { %411 = dma.hbm_to_vmem [thread:$0]  (!%p409_p6), %s687_s1, 64, %s153_s21, [#allocation8]  }
  0x26   : > { %161 = sbr.rel (%p618_p4) target bundleno = 456 (0x1c8), region = 28  ;;  %p694_p7 = scmp.ne.s32.totalorder (!%p618_p4), %s691_s15, 0 }
  0x2b   : > { %547 = dma.done.wait (%p694_p7), [#allocation5], 16  }
  0x2c   : > { %549 = vsyncadd (%p694_p7), [#allocation5], 4294967280 }
  0x2d   : > { %551 = dma.done.wait (%p694_p7), [#allocation8], 64  }
  0x2e   : > { %553 = vsyncadd (%p694_p7), [#allocation8], 4294967232  ;;  %p196_p3 = scmp.eq.s32.totalorder %s560_s9, 0 }
  0x2f   : > { %vm202_vm0 = vcmask (%p196_p3), 0   ;;  %v572_v0 = vmov (%p196_p3), 0.0  }
  0x30   : > { %201 = sbr.rel (!%p196_p3) target bundleno = 53 (0x35), region = 40  ;;  %203 = vst.msk [vmem:[#allocation3] sm:$0x1] (%p196_p3), %vm202_vm0, %v572_v0 }
  0x35 PF: > { %p383_p4 = scmp.ne.s32.totalorder %s560_s9, 0 }
  0x37   : > { %206 = sbr.rel (%p383_p4) target bundleno = 268 (0x10c), region = 44 }
  0x3c   : > { %v207_v1 = vld [vmem:[#allocation7] sm:$0xf]  ;;  %vm210_vm1 = vcmask 1043456   ;;  %v208_v12 = vld [vmem:[#allocation3] sm:$0x1]  ;;  %vm223_vm2 = vcmask 0  }
  0x3d   : > { %v209_v2 = vmul.f32 %v207_v1, %v207_v1  ;;  %v225_v4 = vld [vmem:[#allocation7] sm:$0xf] }
  0x3e   : > { %227 = vst [vmem:[#allocation2] sm:$0xf] %v225_v4 }
  0x3f   : > { %v211_v3 = vsel %vm210_vm1, %v209_v2, 0.0 }
  0x40   : > { %212 = vadd.xlane.f32.xlu0 %v211_v3 }
  0xc9   : > { %v213_v5 = vpop.xlane.xlu0 %212 }
  0xca   : > { %v214_v6 = vrot.slane %v213_v5, 4 }
  0xcc   : > { %v215_v7 = vadd.f32 %v214_v6, %v213_v5 }
  0xce   : > { %v216_v8 = vrot.slane %v215_v7, 2 }
  0xd0   : > { %v217_v9 = vadd.f32 %v216_v8, %v215_v7 }
  0xd2   : > { %v218_v10 = vrot.slane %v217_v9, 1 }
  0xd4   : > { %v219_v11 = vadd.f32 %v218_v10, %v217_v9 }
  0xd6   : > { %390 = vpush %v219_v11 }
 0x107   : > { %s391_s30 = spop %390 }
 0x108   : > { %v221_v13 = vstv %s391_s30 }
 0x109   : > { %v222_v14 = vadd.f32 %v221_v13, %v208_v12 }
 0x10b   : > { %224 = vst.msk [vmem:[#allocation3] sm:$0x1] %vm223_vm2, %v222_v14 }
 0x10c PF: > { %p384_p8 = scmp.ne.s32.totalorder %s560_s9, 1 }
 0x10e   : > { %231 = sbr.rel (%p384_p8) target bundleno = 443 (0x1bb), region = 48 }
 0x113   : > { %v232_v15 = vld [vmem:[#allocation3] sm:$0x1]  ;;  %v573_v16 = vmov 0   ;;  %v249_v24 = vlaneseq  ;;  %v243_v27 = vld [vmem:[#allocation4] sm:$0x1] }
 0x114   : > { %453 = vset.pattern.permute.xlu0 %v573_v16  ;;  %454 = vrsqrt.f32 %v232_v15  ;;  %vm235_vm3 = vcmp.eq.f32.partialorder %v232_v15, inf  ;;  %v238_v18 = vand.u32 2147483648, %v232_v15  ;;  %vm237_vm4 = vcmp.eq.f32.partialorder %v232_v15, 0.0  ;;  %v255_v31 = vld [vmem:[#allocation2] sm:$0xf] }
 0x115   : > { %v250_v25 = vshrl.u32 %v249_v24, 7 }
 0x117   : > { %v251_v26 = vsub.s32 0, %v250_v25 }
 0x121   : > { %v455_v17 = vpop.eup %454 }
 0x122   : > { %v234_v19 = vmul.f32 %v455_v17, %v232_v15 }
 0x124   : > { %v236_v20 = vsel %vm235_vm3, %v232_v15, %v234_v19 }
 0x125   : > { %v239_v21 = vsel %vm237_vm4, %v238_v18, %v236_v20 }
 0x126   : > { %v240_v22 = vadd.f32 1e-06, %v239_v21 }
 0x128   : > { %456 = vrcp.f32 %v240_v22 }
 0x135   : > { %v457_v23 = vpop.eup %456 }
 0x136   : > { %246 = vperm.xlu0 %453, %v457_v23  }
 0x1b1   : > { %v247_v28 = vpop.permute.xlu0 %246 }
 0x1b2   : > { %v252_v29 = vrot.slane %v247_v28, %v251_v26 }
 0x1b4   : > { %v253_v30 = vmul.f32 %v252_v29, %v243_v27 }
 0x1b6   : > { %v260_v32 = vrot.slane %v253_v30, %v251_v26 }
 0x1b8   : > { %v262_v33 = vmul.f32 %v260_v32, %v255_v31 }
 0x1ba   : > { %263 = vst [vmem:[#allocation9] sm:$0xf] %v262_v33 }
 0x1bb PF: > { %p662_p9 = scmp.eq.s32.totalorder %s373_s12, 1  ;;  %s574_s4 = smov [#allocation9]  }
 0x1bc   : > { %s279_s5 = sshll.u32 %s574_s4, 4  ;;  %s280_s5 = int_to_ptr.vmem [resolvable:$true] %s279_s5 }
 0x1bd   : > { %s510_s6 = scalar_lea.vmem %s280_s5, 64  ;;  %s516_s7 = scalar_lea.vmem %s280_s5, 128 }
 0x1be   : > { %p511_p2 = scmp.ne.s32.totalorder %s280_s5, %s510_s6  ;;  %p517_p11 = scmp.lt.s32.totalorder %s280_s5, %s280_s5 }
 0x1bf   : > { %p518_p12 = scmp.lt.s32.totalorder %s516_s7, %s510_s6 }
 0x1c0   : > { %p512_p6 = pnand %p511_p2, %p662_p9 }
 0x1c1   : > { %p519_p13 = por %p518_p12, %p517_p11 }
 0x1c2   : > { %p513_p10 = pneg %p512_p6 }
 0x1c4   : > { %p520_p5 = pnand %p519_p13, %p513_p10 }
 0x1c6   : > { %523 = shalt.err (!%p520_p5)
}
 0x1c7   : > { %401 = dma.vmem_to_hbm [thread:$0]  (%p662_p9), %s280_s5, 64, %s688_s2, [#allocation6]  }
 0x1c8 PF: > { %p423_p0 = scmp.eq.s32.totalorder %s374_s13, 1  ;;  %p696_p1 = scmp.ge.s32.totalorder %s568_s11, 2 }
 0x1ca   : > { %p413_p7 = pnand %p423_p0, %p696_p1 }
 0x1cc   : > { %p414_p3 = pneg %p413_p7 }
 0x1ce   : > { %555 = dma.done.wait (%p414_p3), [#allocation6], 64  }
 0x1cf   : > { %557 = vsyncadd (%p414_p3), [#allocation6], 4294967232  ;;  %s19_s11 = sadd.s32 1, %s568_s11   ;;  %s697_s9 = smov %s564_s10 }
 0x1d0   : > { %p16_p4 = scmp.ge.s32.totalorder %s19_s11, 4   ;;  %s698_s10 = smov %s700_s14 }
 0x1d2   :  { %18 = sbr.rel (!%p16_p4) target bundleno = 6 (0x6), region = 92 }
 0x1d7   :  { %297 = vsyncpa [#allocation5], 1 }
 0x1d8   :  { %299 = vsyncpa [#allocation5 + $0x1], 1 }
 0x1d9   :  { %300 = vsyncpa [#allocation8], 1 }
 0x1da   :  { %302 = vsyncpa [#allocation8 + $0x1], 1 }
 0x1db   :  { %303 = vsyncpa [#allocation6], 1 }
 0x1dc   :  { %305 = vsyncpa [#allocation6 + $0x1], 1 }

</bundles_post_ra>
